<compile_context>
chip_gen: v7x
topology: tpu7x:2x2x1
jax: 0.10.0
libtpu: 0.0.40
codegen_flags: <defaults>
</compile_context>

<pallas_src>
import jax
import jax.numpy as jnp
from jax.experimental import pallas as pl
from jax.experimental.pallas import tpu as pltpu

_HIDDEN = 256        # MLP width of the Actor
_HEAD_W = 128        # lane-dense width of the single fused head output
_LOGSTD_OFF = 64     # log_std weights live in lanes [64, 128)


def _silu(x):
    # f32 SiLU: sigmoid goes to the EUP, multiply to the VPU.
    return x * jax.nn.sigmoid(x)


def actor_kernel(h_ref, z_ref,
                 w1_ref, b1_ref,
                 w2_ref, b2_ref,
                 w3_ref, b3_ref,
                 out_ref,
                 x_scr):
    wd = w1_ref.dtype                     # matmul operand dtype (bf16)
    hd = h_ref.shape[1]

    # Fused concat(h, z): pack both inputs into one bf16 VMEM scratch so
    # layer 1 is a single K = hidden_dim + categorical_dim matmul.
    x_scr[:, :hd] = h_ref[...].astype(wd)
    x_scr[:, hd:] = z_ref[...].astype(wd)

    # Layer 1: Linear(d_in -> 256) + SiLU   (f32 accumulate, f32 SiLU)
    h1 = jnp.dot(x_scr[...], w1_ref[...],
                 preferred_element_type=jnp.float32) + b1_ref[...]
    h1 = _silu(h1).astype(wd)             # cast once after the activation

    # Layer 2: Linear(256 -> 256) + SiLU
    h2 = jnp.dot(h1, w2_ref[...],
                 preferred_element_type=jnp.float32) + b2_ref[...]
    h2 = _silu(h2).astype(wd)

    # Layer 3: single fused head matmul, 128 lane-dense output columns.
    y = jnp.dot(h2, w3_ref[...],
                preferred_element_type=jnp.float32) + b3_ref[...]

    # Clamp ONLY the log_std lanes (>= _LOGSTD_OFF); mean lanes untouched.
    lane = jax.lax.broadcasted_iota(jnp.int32, y.shape, 1)
    y = jnp.where(lane >= _LOGSTD_OFF, jnp.clip(y, -20.0, 2.0), y)
    out_ref[...] = y.astype(out_ref.dtype)


def _pick_batch_tile(B):
    # Tile cap 1024 rows; keep >= 2 grid steps whenever B allows so a
    # ("parallel",) grid can be sharded across both v7x TensorCores.
    cap = min(1024, B if B < 16 else B // 2)
    for t in (1024, 512, 256, 128, 64, 32, 16, 8):
        if t <= cap and B % t == 0:
            return t
    return B


def actor_forward(h, z, params, *, action_dim, out_dtype=jnp.float32):
    """Pallas implementation of Actor.forward.

    h: (B, hidden_dim) f32, z: (B, categorical_dim) f32.
    Returns (mean, log_std), each (B, action_dim).
    """
    assert action_dim <= _LOGSTD_OFF, "fused head layout needs action_dim <= 64"
    B, hd = h.shape
    cd = z.shape[1]
    d_in = hd + cd
    tb = _pick_batch_tile(B)
    grid = (B // tb,)

    act_spec = lambda d: pl.BlockSpec((tb, d), lambda i: (i, 0))
    res_spec = lambda shp: pl.BlockSpec(shp, lambda i: (0, 0))   # weight-resident
    out_spec = pl.BlockSpec((tb, _HEAD_W), lambda i: (i, 0))

    itemsize_out = jnp.dtype(out_dtype).itemsize
    cost = pl.CostEstimate(
        flops=2 * B * (d_in * _HIDDEN + _HIDDEN * _HIDDEN + _HIDDEN * _HEAD_W),
        transcendentals=2 * B * _HIDDEN,
        bytes_accessed=(4 * B * d_in                                   # h, z (f32)
                        + itemsize_out * B * _HEAD_W                   # fused out
                        + 2 * (d_in * _HIDDEN + _HIDDEN * _HIDDEN
                               + _HIDDEN * _HEAD_W)                    # bf16 weights
                        + 4 * (2 * _HIDDEN + _HEAD_W)))                # f32 biases

    out = pl.pallas_call(
        actor_kernel,
        out_shape=jax.ShapeDtypeStruct((B, _HEAD_W), out_dtype),
        grid=grid,
        in_specs=[
            act_spec(hd),                    # h
            act_spec(cd),                    # z
            res_spec((d_in, _HIDDEN)),       # w1 (merged h/z rows)
            res_spec((1, _HIDDEN)),          # b1
            res_spec((_HIDDEN, _HIDDEN)),    # w2
            res_spec((1, _HIDDEN)),          # b2
            res_spec((_HIDDEN, _HEAD_W)),    # w3 (fused head, 128 lanes)
            res_spec((1, _HEAD_W)),          # b3 (fused head, 128 lanes)
        ],
        out_specs=out_spec,
        scratch_shapes=[pltpu.VMEM((tb, d_in), params["w1"].dtype)],
        compiler_params=pltpu.CompilerParams(
            dimension_semantics=("parallel",),
            vmem_limit_bytes=32 * 1024 * 1024),
        cost_estimate=cost,
    )(h, z,
      params["w1"], params["b1"],
      params["w2"], params["b2"],
      params["w3"], params["b3"])

    # Slice the valid lanes; log_std was already clamped in-kernel.
    mean = out[:, :action_dim]
    log_std = out[:, _LOGSTD_OFF:_LOGSTD_OFF + action_dim]
    return mean, log_std


def init_actor_params(key, action_dim, hidden_dim, num_categorical, class_size,
                      weight_dtype=jnp.bfloat16):
    """Synthetic init matching the PyTorch module's shapes.

    Weights stored as (in, out) = PyTorch weight.T:
      - W1 is the full (hidden_dim + categorical_dim, 256) matrix (the kernel
        packs concat(h, z) itself; no split needed).
      - W3 (256, 2*action_dim) packed into a (256, 128) lane-dense head:
        mean -> cols [0, action_dim), log_std -> cols [64, 64 + action_dim)
        (matches torch.chunk(x, 2, dim=-1)).
    """
    assert action_dim <= _LOGSTD_OFF, "fused head layout needs action_dim <= 64"
    categorical_dim = num_categorical * class_size
    d_in = hidden_dim + categorical_dim
    ks = jax.random.split(key, 6)
    s1 = 1.0 / jnp.sqrt(jnp.float32(d_in))
    s2 = 1.0 / jnp.sqrt(jnp.float32(_HIDDEN))

    w1 = jax.random.uniform(ks[0], (d_in, _HIDDEN), jnp.float32, -s1, s1)
    b1 = jax.random.uniform(ks[1], (1, _HIDDEN), jnp.float32, -s1, s1)
    w2 = jax.random.uniform(ks[2], (_HIDDEN, _HIDDEN), jnp.float32, -s2, s2)
    b2 = jax.random.uniform(ks[3], (_HIDDEN, _HIDDEN // _HIDDEN * _HIDDEN), jnp.float32, -s2, s2)[:, : _HIDDEN].reshape(1, _HIDDEN) if False else jax.random.uniform(ks[3], (1, _HIDDEN), jnp.float32, -s2, s2)
    w3 = jax.random.uniform(ks[4], (_HIDDEN, 2 * action_dim), jnp.float32, -s2, s2)
    b3 = jax.random.uniform(ks[5], (1, 2 * action_dim), jnp.float32, -s2, s2)

    w3p = jnp.zeros((_HIDDEN, _HEAD_W), jnp.float32)
    w3p = w3p.at[:, :action_dim].set(w3[:, :action_dim])
    w3p = w3p.at[:, _LOGSTD_OFF:_LOGSTD_OFF + action_dim].set(w3[:, action_dim:])
    b3p = jnp.zeros((1, _HEAD_W), jnp.float32)
    b3p = b3p.at[:, :action_dim].set(b3[:, :action_dim])
    b3p = b3p.at[:, _LOGSTD_OFF:_LOGSTD_OFF + action_dim].set(b3[:, action_dim:])

    wd = weight_dtype
    return {
        "w1": w1.astype(wd), "b1": b1,
        "w2": w2.astype(wd), "b2": b2,
        "w3": w3p.astype(wd), "b3": b3p,
    }


def actor_forward_ref(h, z, params, *, action_dim):
    """Pure-JAX reference mirroring the kernel's numerics (bf16 MXU, f32 acc)."""
    wd = params["w1"].dtype
    x = jnp.concatenate([h, z], axis=-1).astype(wd)
    h1 = _silu(jnp.dot(x, params["w1"],
                       preferred_element_type=jnp.float32) + params["b1"]).astype(wd)
    h2 = _silu(jnp.dot(h1, params["w2"],
                       preferred_element_type=jnp.float32) + params["b2"]).astype(wd)
    y = jnp.dot(h2, params["w3"],
                preferred_element_type=jnp.float32) + params["b3"]
    mean = y[:, :action_dim]
    log_std = jnp.clip(y[:, _LOGSTD_OFF:_LOGSTD_OFF + action_dim], -20.0, 2.0)
    return mean, log_std


if __name__ == "__main__":
    # Small shapes consistent with the module's forward:
    #   hidden_dim=32, num_categorical=4, class_size=8 -> categorical_dim=32
    #   action_dim=6 -> final linear out = 12, chunked into two (B, 6) heads.
    B = 8
    hidden_dim = 32
    num_categorical = 4
    class_size = 8
    action_dim = 6
    categorical_dim = num_categorical * class_size

    key = jax.random.PRNGKey(0)
    k_h, k_z, k_p = jax.random.split(key, 3)
    h = jax.random.normal(k_h, (B, hidden_dim), jnp.float32)
    z = jax.random.normal(k_z, (B, categorical_dim), jnp.float32)
    params = init_actor_params(k_p, action_dim, hidden_dim, num_categorical, class_size)

    fwd = jax.jit(actor_forward, static_argnames=("action_dim",))
    mean, log_std = fwd(h, z, params, action_dim=action_dim)
    jax.block_until_ready((mean, log_std))

    mean_ref, log_std_ref = actor_forward_ref(h, z, params, action_dim=action_dim)
    assert mean.shape == (B, action_dim) and log_std.shape == (B, action_dim)
    assert jnp.allclose(mean, mean_ref, atol=5e-3, rtol=5e-3)
    assert jnp.allclose(log_std, log_std_ref, atol=5e-3, rtol=5e-3)
    assert jnp.all(log_std >= -20.0) and jnp.all(log_std <= 2.0)

    # TODO(synk): get_action's Normal.rsample() sampling path is not part of
    # the forward pass and is left to the host-side JAX wrapper.
    print("KERNEL_OK")
</pallas_src>

<mosaic_0001>
module attributes {stable_mosaic.version = 11 : i64} {
  func.func @actor_kernel(%arg0: i32, %arg1: memref<8x32xf32, #tpu.memory_space<vmem>>, %arg2: memref<8x32xf32, #tpu.memory_space<vmem>>, %arg3: memref<64x256xbf16, #tpu.memory_space<vmem>>, %arg4: memref<1x256xf32, #tpu.memory_space<vmem>>, %arg5: memref<256x256xbf16, #tpu.memory_space<vmem>>, %arg6: memref<1x256xf32, #tpu.memory_space<vmem>>, %arg7: memref<256x128xbf16, #tpu.memory_space<vmem>>, %arg8: memref<1x128xf32, #tpu.memory_space<vmem>>, %arg9: memref<8x128xf32, #tpu.memory_space<vmem>>, %arg10: memref<8x64xbf16, #tpu.memory_space<vmem>>) attributes {dimension_semantics = [#tpu.dimension_semantics<parallel>], iteration_bounds = array<i64: 1>, scalar_prefetch = 0 : i64, scratch_operands = 1 : i64, tpu.core_type = #tpu.core_type<tc>, window_params = [{transform_indices = @transform_0, window_bounds = array<i64: 8, 32>}, {transform_indices = @transform_1, window_bounds = array<i64: 8, 32>}, {pipeline_mode = #tpu.pipeline_mode<synchronous>, transform_indices = @transform_2, window_bounds = array<i64: 64, 256>}, {pipeline_mode = #tpu.pipeline_mode<synchronous>, transform_indices = @transform_3, window_bounds = array<i64: 1, 256>}, {pipeline_mode = #tpu.pipeline_mode<synchronous>, transform_indices = @transform_4, window_bounds = array<i64: 256, 256>}, {pipeline_mode = #tpu.pipeline_mode<synchronous>, transform_indices = @transform_5, window_bounds = array<i64: 1, 256>}, {pipeline_mode = #tpu.pipeline_mode<synchronous>, transform_indices = @transform_6, window_bounds = array<i64: 256, 128>}, {pipeline_mode = #tpu.pipeline_mode<synchronous>, transform_indices = @transform_7, window_bounds = array<i64: 1, 128>}, {transform_indices = @transform_8, window_bounds = array<i64: 8, 128>}]} {
    %c0 = arith.constant 0 : index
    %c0_0 = arith.constant 0 : index
    %0 = vector.load %arg1[%c0, %c0_0] : memref<8x32xf32, #tpu.memory_space<vmem>>, vector<8x32xf32>
    %1 = arith.truncf %0 : vector<8x32xf32> to vector<8x32xbf16>
    %c0_1 = arith.constant 0 : index
    %c0_2 = arith.constant 0 : index
    %2 = vector.load %arg10[%c0_1, %c0_2] : memref<8x64xbf16, #tpu.memory_space<vmem>>, vector<8x32xbf16>
    tpu.vector_store %arg10[%c0_1, %c0_2], %1 {strides = array<i32>} : memref<8x64xbf16, #tpu.memory_space<vmem>>, vector<8x32xbf16>,
    %c0_3 = arith.constant 0 : index
    %c0_4 = arith.constant 0 : index
    %3 = vector.load %arg2[%c0_3, %c0_4] : memref<8x32xf32, #tpu.memory_space<vmem>>, vector<8x32xf32>
    %4 = arith.truncf %3 : vector<8x32xf32> to vector<8x32xbf16>
    %c0_5 = arith.constant 0 : index
    %c32 = arith.constant 32 : index
    %5 = vector.load %arg10[%c0_5, %c32] : memref<8x64xbf16, #tpu.memory_space<vmem>>, vector<8x32xbf16>
    tpu.vector_store %arg10[%c0_5, %c32], %4 {strides = array<i32>} : memref<8x64xbf16, #tpu.memory_space<vmem>>, vector<8x32xbf16>,
    %c0_6 = arith.constant 0 : index
    %c0_7 = arith.constant 0 : index
    %6 = vector.load %arg10[%c0_6, %c0_7] : memref<8x64xbf16, #tpu.memory_space<vmem>>, vector<8x64xbf16>
    %c0_8 = arith.constant 0 : index
    %c0_9 = arith.constant 0 : index
    %7 = vector.load %arg3[%c0_8, %c0_9] : memref<64x256xbf16, #tpu.memory_space<vmem>>, vector<64x256xbf16>
    %cst = arith.constant dense<0.000000e+00> : vector<8x256xf32>
    %8 = tpu.matmul %6, %7, %cst {dimension_numbers = #tpu.dot_dimension_numbers<[1], [0], [0], [1], [0, 0, 1, 1], [], []>} : vector<8x64xbf16>, vector<64x256xbf16>, vector<8x256xf32> -> vector<8x256xf32>
    %c0_10 = arith.constant 0 : index
    %c0_11 = arith.constant 0 : index
    %9 = vector.load %arg4[%c0_10, %c0_11] : memref<1x256xf32, #tpu.memory_space<vmem>>, vector<1x256xf32>
    %10 = vector.broadcast %9 : vector<1x256xf32> to vector<8x256xf32>
    %11 = arith.addf %8, %10 : vector<8x256xf32>
    %12 = arith.negf %11 : vector<8x256xf32>
    %13 = math.exp %12 : vector<8x256xf32>
    %cst_12 = arith.constant 1.000000e+00 : f32
    %14 = vector.broadcast %cst_12 : f32 to vector<8x256xf32>
    %15 = arith.addf %14, %13 : vector<8x256xf32>
    %16 = arith.divf %14, %15 : vector<8x256xf32>
    %17 = arith.mulf %11, %16 : vector<8x256xf32>
    %18 = arith.truncf %17 : vector<8x256xf32> to vector<8x256xbf16>
    %c0_13 = arith.constant 0 : index
    %c0_14 = arith.constant 0 : index
    %19 = vector.load %arg5[%c0_13, %c0_14] : memref<256x256xbf16, #tpu.memory_space<vmem>>, vector<256x256xbf16>
    %cst_15 = arith.constant dense<0.000000e+00> : vector<8x256xf32>
    %20 = tpu.matmul %18, %19, %cst_15 {dimension_numbers = #tpu.dot_dimension_numbers<[1], [0], [0], [1], [0, 0, 1, 1], [], []>} : vector<8x256xbf16>, vector<256x256xbf16>, vector<8x256xf32> -> vector<8x256xf32>
    %c0_16 = arith.constant 0 : index
    %c0_17 = arith.constant 0 : index
    %21 = vector.load %arg6[%c0_16, %c0_17] : memref<1x256xf32, #tpu.memory_space<vmem>>, vector<1x256xf32>
    %22 = vector.broadcast %21 : vector<1x256xf32> to vector<8x256xf32>
    %23 = arith.addf %20, %22 : vector<8x256xf32>
    %24 = arith.negf %23 : vector<8x256xf32>
    %25 = math.exp %24 : vector<8x256xf32>
    %cst_18 = arith.constant 1.000000e+00 : f32
    %26 = vector.broadcast %cst_18 : f32 to vector<8x256xf32>
    %27 = arith.addf %26, %25 : vector<8x256xf32>
    %28 = arith.divf %26, %27 : vector<8x256xf32>
    %29 = arith.mulf %23, %28 : vector<8x256xf32>
    %30 = arith.truncf %29 : vector<8x256xf32> to vector<8x256xbf16>
    %c0_19 = arith.constant 0 : index
    %c0_20 = arith.constant 0 : index
    %31 = vector.load %arg7[%c0_19, %c0_20] : memref<256x128xbf16, #tpu.memory_space<vmem>>, vector<256x128xbf16>
    %cst_21 = arith.constant dense<0.000000e+00> : vector<8x128xf32>
    %32 = tpu.matmul %30, %31, %cst_21 {dimension_numbers = #tpu.dot_dimension_numbers<[1], [0], [0], [1], [0, 0, 1, 1], [], []>} : vector<8x256xbf16>, vector<256x128xbf16>, vector<8x128xf32> -> vector<8x128xf32>
    %c0_22 = arith.constant 0 : index
    %c0_23 = arith.constant 0 : index
    %33 = vector.load %arg8[%c0_22, %c0_23] : memref<1x128xf32, #tpu.memory_space<vmem>>, vector<1x128xf32>
    %34 = vector.broadcast %33 : vector<1x128xf32> to vector<8x128xf32>
    %35 = arith.addf %32, %34 : vector<8x128xf32>
    %36 = tpu.iota {dimensions = array<i32: 1>} : vector<8x128xi32>
    %c64_i32 = arith.constant 64 : i32
    %37 = vector.broadcast %c64_i32 : i32 to vector<8x128xi32>
    %38 = arith.cmpi sge, %36, %37 : vector<8x128xi32>
    %cst_24 = arith.constant -2.000000e+01 : f32
    %cst_25 = arith.constant 2.000000e+00 : f32
    %39 = vector.broadcast %cst_24 : f32 to vector<8x128xf32>
    %40 = arith.maximumf %39, %35 : vector<8x128xf32>
    %41 = vector.broadcast %cst_25 : f32 to vector<8x128xf32>
    %42 = arith.minimumf %41, %40 : vector<8x128xf32>
    %43 = arith.select %38, %42, %35 : vector<8x128xi1>, vector<8x128xf32>
    %c0_26 = arith.constant 0 : index
    %c0_27 = arith.constant 0 : index
    %44 = vector.load %arg9[%c0_26, %c0_27] : memref<8x128xf32, #tpu.memory_space<vmem>>, vector<8x128xf32>
    tpu.vector_store %arg9[%c0_26, %c0_27], %43 {strides = array<i32>} : memref<8x128xf32, #tpu.memory_space<vmem>>, vector<8x128xf32>,
    return
  }
  func.func @transform_0(%arg0: i32) -> (i32, i32) {
    %c0_i32 = arith.constant 0 : i32
    %c0_i32_0 = arith.constant 0 : i32
    return %arg0, %c0_i32 : i32, i32
  }
  func.func @transform_1(%arg0: i32) -> (i32, i32) {
    %c0_i32 = arith.constant 0 : i32
    %c0_i32_0 = arith.constant 0 : i32
    return %arg0, %c0_i32 : i32, i32
  }
  func.func @transform_2(%arg0: i32) -> (i32, i32) {
    %c0_i32 = arith.constant 0 : i32
    %c0_i32_0 = arith.constant 0 : i32
    %c0_i32_1 = arith.constant 0 : i32
    return %c0_i32, %c0_i32_0 : i32, i32
  }
  func.func @transform_3(%arg0: i32) -> (i32, i32) {
    %c0_i32 = arith.constant 0 : i32
    %c0_i32_0 = arith.constant 0 : i32
    %c0_i32_1 = arith.constant 0 : i32
    return %c0_i32, %c0_i32_0 : i32, i32
  }
  func.func @transform_4(%arg0: i32) -> (i32, i32) {
    %c0_i32 = arith.constant 0 : i32
    %c0_i32_0 = arith.constant 0 : i32
    %c0_i32_1 = arith.constant 0 : i32
    return %c0_i32, %c0_i32_0 : i32, i32
  }
  func.func @transform_5(%arg0: i32) -> (i32, i32) {
    %c0_i32 = arith.constant 0 : i32
    %c0_i32_0 = arith.constant 0 : i32
    %c0_i32_1 = arith.constant 0 : i32
    return %c0_i32, %c0_i32_0 : i32, i32
  }
  func.func @transform_6(%arg0: i32) -> (i32, i32) {
    %c0_i32 = arith.constant 0 : i32
    %c0_i32_0 = arith.constant 0 : i32
    %c0_i32_1 = arith.constant 0 : i32
    return %c0_i32, %c0_i32_0 : i32, i32
  }
  func.func @transform_7(%arg0: i32) -> (i32, i32) {
    %c0_i32 = arith.constant 0 : i32
    %c0_i32_0 = arith.constant 0 : i32
    %c0_i32_1 = arith.constant 0 : i32
    return %c0_i32, %c0_i32_0 : i32, i32
  }
  func.func @transform_8(%arg0: i32) -> (i32, i32) {
    %c0_i32 = arith.constant 0 : i32
    %c0_i32_0 = arith.constant 0 : i32
    return %arg0, %c0_i32 : i32, i32
  }
}

</mosaic_0001>

<bundles_post_ra>
// kernel: actor_forward.1
= control target key start
LH: loop header
LB: loop body
LE: loop exit
PB: predicated region body
PF: predicated region fallthrough
CT: control target
= control target key end

     0   :  { %13 = vsyncpa [#allocation4], 0  ;;  %s1125_s0 = inlined_call_operand.hbm [shape: f32[8,32], index: 0, kind: input, shape index: {}]   ;;  %s1126_s1 = inlined_call_operand.hbm [shape: f32[8,32], index: 1, kind: input, shape index: {}]   ;;  %s1127_s2 = inlined_call_operand.hbm [shape: bf16[64,256], index: 2, kind: input, shape index: {}]   ;;  %s1128_s3 = inlined_call_operand.vmem [shape: f32[1,256], index: 3, kind: input, shape index: {}]   ;;  %s1129_s4 = inlined_call_operand.hbm [shape: bf16[256,256], index: 4, kind: input, shape index: {}]   ;;  %s1130_s5 = inlined_call_operand.vmem [shape: f32[1,256], index: 5, kind: input, shape index: {}]   ;;  %s1131_s6 = inlined_call_operand.hbm [shape: bf16[256,128], index: 6, kind: input, shape index: {}]   ;;  %s1132_s7 = inlined_call_operand.vmem [shape: f32[1,128], index: 7, kind: input, shape index: {}]   ;;  %s1133_s8 = inlined_call_operand.vmem [shape: f32[8,128], index: 8, kind: output, shape index: {}]  }
   0x1   :  { %14 = vsyncpa [#allocation6], 0 }
   0x2   :  { %15 = vsyncpa [#allocation9], 0  ;;  %s985_s27 = smov [#allocation5]   ;;  %s869_s9 = scalar_lea.hbm %s1126_s1, 128 }
   0x3   :  { %s32_s28 = sshll.u32 %s985_s27, 4  ;;  %p870_p0 = scmp.ne.s32.totalorder %s1126_s1, %s869_s9  ;;  %s33_s28 = int_to_ptr.vmem [resolvable:$true] %s32_s28 }
   0x4   :  { %p873_p1 = scmp.lt.u32.totalorder %s869_s9, %s1126_s1 }
   0x6   :  { %p875_p2 = pnand %p873_p1, %p870_p0 }
   0x8   :  { %878 = shalt.err (!%p875_p2)
}
   0x9   :  { %s879_s14 = scalar_lea.vmem %s33_s28, 128  ;;  %p884_p4 = scmp.lt.s32.totalorder %s33_s28, %s33_s28 }
   0xa   :  { %p880_p3 = scmp.ne.s32.totalorder %s33_s28, %s879_s14  ;;  %p885_p5 = scmp.lt.s32.totalorder %s879_s14, %s879_s14 }
   0xc   :  { %p886_p6 = por %p885_p5, %p884_p4 }
   0xe   :  { %p887_p7 = pnand %p886_p6, %p880_p3 }
  0x10   :  { %890 = shalt.err (!%p887_p7)
}
  0x11   :  { %35 = dma.hbm_to_vmem [thread:$0]  %s1126_s1, 128, %s33_s28, [#allocation6]  }
  0x12   :  { %s986_s17 = smov [#allocation8]   ;;  %s987_s19 = smov [#allocation3]  }
  0x13   :  { %s55_s18 = sshll.u32 %s986_s17, 4  ;;  %s22_s20 = sshll.u32 %s987_s19, 4  ;;  %s56_s18 = int_to_ptr.vmem [resolvable:$true] %s55_s18  ;;  %s23_s20 = int_to_ptr.vmem [resolvable:$true] %s22_s20 }
  0x14   :  { %s891_s23 = scalar_lea.hbm %s1129_s4, 4096 }
  0x15   :  { %p892_p8 = scmp.ne.s32.totalorder %s1129_s4, %s891_s23  ;;  %p895_p9 = scmp.lt.u32.totalorder %s891_s23, %s1129_s4 }
  0x17   :  { %p897_p10 = pnand %p895_p9, %p892_p8 }
  0x19   :  { %900 = shalt.err (!%p897_p10)
}
  0x1a   :  { %s901_s1 = scalar_lea.vmem %s56_s18, 4096  ;;  %p906_p12 = scmp.lt.s32.totalorder %s56_s18, %s56_s18 }
  0x1b   :  { %p902_p11 = scmp.ne.s32.totalorder %s56_s18, %s901_s1  ;;  %p907_p13 = scmp.lt.s32.totalorder %s901_s1, %s901_s1 }
  0x1d   :  { %p908_p0 = por %p907_p13, %p906_p12 }
  0x1f   :  { %p909_p1 = pnand %p908_p0, %p902_p11 }
  0x21   :  { %912 = shalt.err (!%p909_p1)
}
  0x22   :  { %s988_s28 = smov 128   ;;  %s989_s29 = smov 8  }
  0x23   :  { %61 = dma.hbm_to_vmem [thread:$0]  %s1129_s4, 4096, %s56_s18, [#allocation9], %s988_s28, %s988_s28, %s989_s29  }
  0x24   :  { %s913_s12 = scalar_lea.hbm %s1125_s0, 128 }
  0x25   :  { %p914_p2 = scmp.ne.s32.totalorder %s1125_s0, %s913_s12  ;;  %p917_p3 = scmp.lt.u32.totalorder %s913_s12, %s1125_s0 }
  0x27   :  { %p919_p4 = pnand %p917_p3, %p914_p2 }
  0x29   :  { %922 = shalt.err (!%p919_p4)
}
  0x2a   :  { %s923_s17 = scalar_lea.vmem %s23_s20, 128  ;;  %p928_p6 = scmp.lt.s32.totalorder %s23_s20, %s23_s20 }
  0x2b   :  { %p924_p5 = scmp.ne.s32.totalorder %s23_s20, %s923_s17  ;;  %p929_p7 = scmp.lt.s32.totalorder %s923_s17, %s923_s17 }
  0x2d   :  { %p930_p8 = por %p929_p7, %p928_p6 }
  0x2f   :  { %p931_p9 = pnand %p930_p8, %p924_p5 }
  0x31   :  { %934 = shalt.err (!%p931_p9)
}
  0x32   :  { %25 = dma.hbm_to_vmem [thread:$0]  %s1125_s0, 128, %s23_s20, [#allocation4]  }
  0x33   :  { %s990_s19 = smov [#allocation7]   ;;  %s991_s22 = smov [#allocation10]  }
  0x34   :  { %s41_s21 = sshll.u32 %s990_s19, 4  ;;  %s69_s23 = sshll.u32 %s991_s22, 4  ;;  %s42_s21 = int_to_ptr.vmem [resolvable:$true] %s41_s21  ;;  %s70_s23 = int_to_ptr.vmem [resolvable:$true] %s69_s23 }
  0x35   :  { %s935_s26 = scalar_lea.hbm %s1127_s2, 1024 }
  0x36   :  { %p936_p10 = scmp.ne.s32.totalorder %s1127_s2, %s935_s26  ;;  %p939_p11 = scmp.lt.u32.totalorder %s935_s26, %s1127_s2 }
  0x38   :  { %p941_p12 = pnand %p939_p11, %p936_p10 }
  0x3a   :  { %944 = shalt.err (!%p941_p12)
}
  0x3b   :  { %s945_s0 = scalar_lea.vmem %s42_s21, 1024  ;;  %p950_p0 = scmp.lt.s32.totalorder %s42_s21, %s42_s21 }
  0x3c   :  { %p946_p13 = scmp.ne.s32.totalorder %s42_s21, %s945_s0  ;;  %p951_p1 = scmp.lt.s32.totalorder %s945_s0, %s945_s0 }
  0x3e   :  { %p952_p2 = por %p951_p1, %p950_p0 }
  0x40   :  { %p953_p3 = pnand %p952_p2, %p946_p13 }
  0x42   :  { %956 = shalt.err (!%p953_p3)
}
  0x43   :  { %47 = dma.hbm_to_vmem [thread:$0]  %s1127_s2, 1024, %s42_s21, [#allocation6], %s988_s28, %s988_s28, %s989_s29  }
  0x44   :  { %s957_s13 = scalar_lea.hbm %s1131_s6, 2048 }
  0x45   :  { %p958_p4 = scmp.ne.s32.totalorder %s1131_s6, %s957_s13  ;;  %p961_p5 = scmp.lt.u32.totalorder %s957_s13, %s1131_s6 }
  0x47   :  { %p963_p6 = pnand %p961_p5, %p958_p4 }
  0x49   :  { %966 = shalt.err (!%p963_p6)
}
  0x4a   :  { %s967_s4 = scalar_lea.vmem %s70_s23, 2048  ;;  %p972_p8 = scmp.lt.s32.totalorder %s70_s23, %s70_s23 }
  0x4b   :  { %p968_p7 = scmp.ne.s32.totalorder %s70_s23, %s967_s4  ;;  %p973_p9 = scmp.lt.s32.totalorder %s967_s4, %s967_s4 }
  0x4d   :  { %p974_p10 = por %p973_p9, %p972_p8 }
  0x4f   :  { %p975_p11 = pnand %p974_p10, %p968_p7 }
  0x51   :  { %978 = shalt.err (!%p975_p11)
}
  0x52   :  { %s992_s2 = smov 64   ;;  %s993_s28 = smov 4  }
  0x53   :  { %75 = dma.hbm_to_vmem [thread:$0]  %s1131_s6, 2048, %s70_s23, [#allocation9], %s992_s2, %s992_s2, %s993_s28  }
  0x54   :  { %979 = dma.done.wait [#allocation4], 128  }
  0x55   :  { %980 = vsyncadd [#allocation4], 4294967168 }
  0x56   :  { %981 = dma.done.wait [#allocation6], 1152  }
  0x57   :  { %982 = vsyncadd [#allocation6], 4294966144 }
  0x58   :  { %983 = dma.done.wait [#allocation9], 6144  }
  0x59   :  { %984 = vsyncadd [#allocation9], 4294961152  ;;  %v994_v0 = vmov 0   ;;  %v98_v1 = vld [vmem:[#allocation5] sm:$0xff]  ;;  %v777_v3 = vld [vmem:[#allocation7 + $0x4] ss:$8 sps:$4 sm:$0xff]   ;;  %v119_v47 = vlaneseq }
  0x5a   :  { %205 = vmatprep.mubr.bf16.mxu0 %v994_v0  ;;  %v743_v2 = vpack.c.bf16 %v98_v1, %v98_v1  ;;  %v779_v4 = vld [vmem:[#allocation7] ss:$8 sps:$4 sm:$0xff]   ;;  %v780_v5 = vld [vmem:[#allocation7 + $0x14] ss:$8 sps:$4 sm:$0xff]   ;;  %s995_s19 = smov 32   ;;  %173 = vmatprep.subr.bf16.mxu0 %v777_v3  ;;  %vm96_vm0 = vcmask 257024  }
  0x5b   :  { %v94_v6 = vld [vmem:[#allocation3] sm:$0xff]  ;;  %174 = vmatpush1.bf16.msra.mxu0 %v779_v4  ;;  %v783_v9 = vld [vmem:[#allocation7 + $0x24] ss:$8 sps:$4 sm:$0xff]   ;;  %v791_v11 = vld [vmem:[#allocation8] ss:$8 sps:$4 sm:$0xff]   ;;  %vm106_vm1 = vcmask 519424  }
  0x5c   :  { %103 = vrot.lane.b32.xlu0 %v743_v2, %s995_s19  ;;  %v782_v7 = vld [vmem:[#allocation7 + $0x10] ss:$8 sps:$4 sm:$0xff]   ;;  %v95_v8 = vpack.c.bf16 %v94_v6, %v94_v6  ;;  %175 = vmatprep.subr.bf16.mxu0 %v780_v5  ;;  %v789_v10 = vld [vmem:[#allocation8 + $0x4] ss:$8 sps:$4 sm:$0xff]   ;;  %v785_v12 = vld [vmem:[#allocation7 + $0x20] ss:$8 sps:$4 sm:$0xff]  }
  0x5d   :  { %434 = vmatprep.subr.bf16.mxu1 %v789_v10  ;;  %v792_v13 = vld [vmem:[#allocation8 + $0x14] ss:$8 sps:$4 sm:$0xff]   ;;  %v794_v15 = vld [vmem:[#allocation8 + $0x10] ss:$8 sps:$4 sm:$0xff]   ;;  %v795_v16 = vld [vmem:[#allocation8 + $0x24] ss:$8 sps:$4 sm:$0xff]  }
  0x5e   :  { %97 = vst.msk [vmem:[#allocation2] sm:$0xf] %vm96_vm0, %v95_v8  ;;  %v786_v14 = vld [vmem:[#allocation7 + $0x34] ss:$8 sps:$4 sm:$0xff]   ;;  %435 = vmatpush1.bf16.msra.mxu1 %v791_v11  ;;  %v788_v17 = vld [vmem:[#allocation7 + $0x30] ss:$8 sps:$4 sm:$0xff]  }
  0x5f   :  { %176 = vmatpush1.bf16.msra.mxu0 %v782_v7  ;;  %436 = vmatprep.subr.bf16.mxu1 %v792_v13  ;;  %v797_v18 = vld [vmem:[#allocation8 + $0x20] ss:$8 sps:$4 sm:$0xff]   ;;  %v798_v19 = vld [vmem:[#allocation8 + $0x34] ss:$8 sps:$4 sm:$0xff]   ;;  %v800_v20 = vld [vmem:[#allocation8 + $0x30] ss:$8 sps:$4 sm:$0xff]  }
  0x60   :  { %177 = vmatprep.subr.bf16.mxu0 %v783_v9  ;;  %v801_v21 = vld [vmem:[#allocation8 + $0x44] ss:$8 sps:$4 sm:$0xff]   ;;  %v803_v22 = vld [vmem:[#allocation8 + $0x40] ss:$8 sps:$4 sm:$0xff]   ;;  %v804_v23 = vld [vmem:[#allocation8 + $0x54] ss:$8 sps:$4 sm:$0xff]  }
  0x61   :  { %v806_v24 = vld [vmem:[#allocation8 + $0x50] ss:$8 sps:$4 sm:$0xff]   ;;  %v807_v25 = vld [vmem:[#allocation8 + $0x64] ss:$8 sps:$4 sm:$0xff]   ;;  %v809_v26 = vld [vmem:[#allocation8 + $0x60] ss:$8 sps:$4 sm:$0xff]  }
  0x62   :  { %437 = vmatpush1.bf16.msra.mxu1 %v794_v15  ;;  %v810_v27 = vld [vmem:[#allocation8 + $0x74] ss:$8 sps:$4 sm:$0xff]   ;;  %vm169_vm2 = vcmask 523264   ;;  %v812_v30 = vld [vmem:[#allocation8 + $0x70] ss:$8 sps:$4 sm:$0xff]   ;;  %v1108_v48 = vshrl.u32 %v119_v47, 7 }
  0x63   :  { %178 = vmatpush1.bf16.msra.mxu0 %v785_v12  ;;  %438 = vmatprep.subr.bf16.mxu1 %v795_v16  ;;  %v813_v31 = vld [vmem:[#allocation8 + $0x84] ss:$8 sps:$4 sm:$0xff]   ;;  %v815_v32 = vld [vmem:[#allocation8 + $0x80] ss:$8 sps:$4 sm:$0xff]   ;;  %v816_v33 = vld [vmem:[#allocation8 + $0x94] ss:$8 sps:$4 sm:$0xff]  }
  0x64   :  { %179 = vmatprep.subr.bf16.mxu0 %v786_v14  ;;  %v818_v34 = vld [vmem:[#allocation8 + $0x90] ss:$8 sps:$4 sm:$0xff]   ;;  %v819_v35 = vld [vmem:[#allocation8 + $0xa4] ss:$8 sps:$4 sm:$0xff]   ;;  %v821_v36 = vld [vmem:[#allocation8 + $0xa0] ss:$8 sps:$4 sm:$0xff]  }
  0x65   :  { %v822_v37 = vld [vmem:[#allocation8 + $0xb4] ss:$8 sps:$4 sm:$0xff]   ;;  %v824_v38 = vld [vmem:[#allocation8 + $0xb0] ss:$8 sps:$4 sm:$0xff]   ;;  %v825_v39 = vld [vmem:[#allocation8 + $0xc4] ss:$8 sps:$4 sm:$0xff]  }
  0x66   :  { %439 = vmatpush1.bf16.msra.mxu1 %v797_v18  ;;  %v827_v40 = vld [vmem:[#allocation8 + $0xc0] ss:$8 sps:$4 sm:$0xff]   ;;  %v828_v41 = vld [vmem:[#allocation8 + $0xd4] ss:$8 sps:$4 sm:$0xff]   ;;  %v830_v42 = vld [vmem:[#allocation8 + $0xd0] ss:$8 sps:$4 sm:$0xff]  }
  0x67   :  { %180 = vmatpush1.bf16.msra.mxu0 %v788_v17  ;;  %440 = vmatprep.subr.bf16.mxu1 %v798_v19  ;;  %v831_v43 = vld [vmem:[#allocation8 + $0xe4] ss:$8 sps:$4 sm:$0xff]   ;;  %v833_v44 = vld [vmem:[#allocation8 + $0xe0] ss:$8 sps:$4 sm:$0xff]   ;;  %v834_v45 = vld [vmem:[#allocation8 + $0xf4] ss:$8 sps:$4 sm:$0xff]  }
  0x68   :  { %v836_v46 = vld [vmem:[#allocation8 + $0xf0] ss:$8 sps:$4 sm:$0xff]   ;;  %v121_v49 = vsub.s32 0, %v1108_v48  ;;  %v117_v50 = vld [vmem:[%s1128_s3] sm:$0x3]  ;;  %v125_v51 = vsub.s32 1, %v1108_v48 }
  0x69   :  { %v837_v8 = vld [vmem:[#allocation10 + $0x40] sm:$0xff]   ;;  %v839_v10 = vld [vmem:[#allocation10 + $0x48] sm:$0xff]   ;;  %v841_v12 = vld [vmem:[#allocation10 + $0x50] sm:$0xff]  }
  0x6a   :  { %441 = vmatpush1.bf16.msra.mxu1 %v800_v20  ;;  %v122_v52 = vrot.slane %v117_v50, %v121_v49  ;;  %v126_v53 = vrot.slane %v117_v50, %v125_v51  ;;  %v838_v9 = vld [vmem:[#allocation10] sm:$0xff]   ;;  %744 = vmatprep.subr.bf16.mxu0 %v837_v8  ;;  %v840_v11 = vld [vmem:[#allocation10 + $0x8] sm:$0xff]   ;;  %v842_v13 = vld [vmem:[#allocation10 + $0x10] sm:$0xff]  }
  0x6b   :  { %442 = vmatprep.subr.bf16.mxu1 %v801_v21  ;;  %v843_v14 = vld [vmem:[#allocation10 + $0x58] sm:$0xff]   ;;  %v845_v16 = vld [vmem:[#allocation10 + $0x60] sm:$0xff]   ;;  %v847_v18 = vld [vmem:[#allocation10 + $0x68] sm:$0xff]  }
  0x6c   :  { %v844_v15 = vld [vmem:[#allocation10 + $0x18] sm:$0xff]   ;;  %v846_v17 = vld [vmem:[#allocation10 + $0x20] sm:$0xff]   ;;  %v848_v19 = vld [vmem:[#allocation10 + $0x28] sm:$0xff]  }
  0x6d   :  { %v849_v20 = vld [vmem:[#allocation10 + $0x70] sm:$0xff]  }
  0x6e   :  { %443 = vmatpush1.bf16.msra.mxu1 %v803_v22  ;;  %v850_v21 = vld [vmem:[#allocation10 + $0x30] sm:$0xff]   ;;  %v851_v22 = vld [vmem:[#allocation10 + $0x78] sm:$0xff]  }
  0x6f   :  { %444 = vmatprep.subr.bf16.mxu1 %v804_v23  ;;  %v852_v23 = vld [vmem:[#allocation10 + $0x38] sm:$0xff]  }
  0x72   :  { %445 = vmatpush1.bf16.msra.mxu1 %v806_v24  ;;  %v262_v24 = vld [vmem:[%s1130_s5] sm:$0x3] }
  0x73   :  { %446 = vmatprep.subr.bf16.mxu1 %v807_v25  ;;  %v267_v25 = vrot.slane %v262_v24, %v121_v49 }
  0x76   :  { %447 = vmatpush1.bf16.msra.mxu1 %v809_v26  ;;  %v271_v26 = vrot.slane %v262_v24, %v125_v51  ;;  %v667_v51 = vand.u32 127, %v119_v47 }
  0x77   :  { %448 = vmatprep.subr.bf16.mxu1 %v810_v27 }
  0x78   :  { %vm668_vm3 = vcmp.ge.s32.totalorder %v667_v51, 64 }
  0x7a   :  { %449 = vmatpush1.bf16.msra.mxu1 %v812_v30 }
  0x7b   :  { %450 = vmatprep.subr.bf16.mxu1 %v813_v31 }
  0x7e   :  { %451 = vmatpush1.bf16.msra.mxu1 %v815_v32 }
  0x7f   :  { %452 = vmatprep.subr.bf16.mxu1 %v816_v33 }
  0x82   :  { %453 = vmatpush1.bf16.msra.mxu1 %v818_v34 }
  0x83   :  { %454 = vmatprep.subr.bf16.mxu1 %v819_v35 }
  0x86   :  { %455 = vmatpush1.bf16.msra.mxu1 %v821_v36 }
  0x87   :  { %456 = vmatprep.subr.bf16.mxu1 %v822_v37 }
  0x8a   :  { %457 = vmatpush1.bf16.msra.mxu1 %v824_v38 }
  0x8b   :  { %458 = vmatprep.subr.bf16.mxu1 %v825_v39 }
  0x8e   :  { %459 = vmatpush1.bf16.msra.mxu1 %v827_v40 }
  0x8f   :  { %460 = vmatprep.subr.bf16.mxu1 %v828_v41 }
  0x92   :  { %461 = vmatpush1.bf16.msra.mxu1 %v830_v42 }
  0x93   :  { %462 = vmatprep.subr.bf16.mxu1 %v831_v43 }
  0x96   :  { %463 = vmatpush1.bf16.msra.mxu1 %v833_v44 }
  0x97   :  { %464 = vmatprep.subr.bf16.mxu1 %v834_v45 }
  0x9a   :  { %465 = vmatpush1.bf16.msra.mxu1 %v836_v46  ;;  %v726_v46 = vld [vmem:[%s1132_s7] ss:$0 sm:$0xff] }
  0xce   :  { %v104_v28 = vpop.permute.xlu0 %103 }
  0xcf   :  { %107 = vst.msk [vmem:[#allocation2] sm:$0xf] %vm106_vm1, %v104_v28 }
  0xd6   :  { %v108_v29 = vld [vmem:[#allocation2] sm:$0xf] }
  0xd7   :  { %689 = vmatmul.mubr.msk.bf16.vlgmr.msra.gmra.mrb[0].mxu0 %vm169_vm2, %v108_v29 }
  0xd8   :  { %745 = vmatpush3.bf16.msra.mxu0 %v838_v9 }
  0xd9   :  { %746 = vmatprep.subr.bf16.mxu0 %v839_v10 }
  0xdc   :  { %747 = vmatpush3.bf16.msra.mxu0 %v840_v11 }
  0xdd   :  { %748 = vmatprep.subr.bf16.mxu0 %v841_v12 }
  0xe0   :  { %749 = vmatpush3.bf16.msra.mxu0 %v842_v13 }
  0xe1   :  { %750 = vmatprep.subr.bf16.mxu0 %v843_v14 }
  0xe4   :  { %751 = vmatpush3.bf16.msra.mxu0 %v844_v15 }
  0xe5   :  { %752 = vmatprep.subr.bf16.mxu0 %v845_v16 }
  0xe8   :  { %753 = vmatpush3.bf16.msra.mxu0 %v846_v17 }
  0xe9   :  { %754 = vmatprep.subr.bf16.mxu0 %v847_v18 }
  0xec   :  { %755 = vmatpush3.bf16.msra.mxu0 %v848_v19 }
  0xed   :  { %756 = vmatprep.subr.bf16.mxu0 %v849_v20 }
  0xf0   :  { %757 = vmatpush3.bf16.msra.mxu0 %v850_v21 }
  0xf1   :  { %758 = vmatprep.subr.bf16.mxu0 %v851_v22 }
  0xf4   :  { %759 = vmatpush3.bf16.msra.mxu0 %v852_v23 }
 0x1aa   :  { %v207_v54 = vpop.f32.mrb[0].mxu0 }
 0x1ab   :  { %v208_v55 = vadd.f32 %v207_v54, %v122_v52  ;;  %v209_v56 = vpop.f32.mrb[1].mxu0 }
 0x1ac   :  { %v210_v57 = vadd.f32 %v209_v56, %v126_v53  ;;  %v211_v58 = vpop.f32.mrb[2].mxu0 }
 0x1ad   :  { %v690_v59 = vmul.f32 -1.442695, %v208_v55  ;;  %v212_v60 = vpop.f32.mrb[3].mxu0 }
 0x1ae   :  { %v691_v61 = vmul.f32 -1.442695, %v210_v57 }
 0x1af   :  { %853 = vpow2.f32 %v690_v59 }
 0x1b0   :  { %855 = vpow2.f32 %v691_v61 }
 0x1b9   :  { %v854_v62 = vpop.eup %853 }
 0x1ba   :  { %v856_v63 = vpop.eup %855  ;;  %v220_v0 = vadd.f32 1.0, %v854_v62 }
 0x1bb   :  { %v221_v1 = vadd.f32 1.0, %v856_v63 }
 0x1bc   :  { %857 = vrcp.f32 %v220_v0 }
 0x1bd   :  { %859 = vrcp.f32 %v221_v1 }
 0x1c6   :  { %v858_v2 = vpop.eup %857 }
 0x1c7   :  { %v860_v3 = vpop.eup %859  ;;  %v226_v4 = vmul.f32 %v858_v2, %v208_v55 }
 0x1c8   :  { %v227_v5 = vmul.f32 %v860_v3, %v210_v57 }
 0x1c9   :  { %v228_v7 = vpack.c.bf16 %v226_v4, %v226_v4 }
 0x1ca   :  { %v229_v6 = vpack.c.bf16 %v227_v5, %v227_v5 }
 0x1cc   :  { %466 = vmatprep.mubr.bf16.mxu1 %v229_v6 }
 0x1cd   :  { %467 = vmatmul.mubr.bf16.vlgmr.msra.gmra.mrb[0].mxu1 %v228_v7 }
 0x2a0   :  { %v468_v27 = vpop.f32.mrb[0].mxu1 }
 0x2a1   :  { %v469_v28 = vadd.f32 %v468_v27, %v267_v25  ;;  %v470_v29 = vpop.f32.mrb[1].mxu1 }
 0x2a2   :  { %v471_v30 = vadd.f32 %v470_v29, %v271_v26  ;;  %v472_v31 = vpop.f32.mrb[2].mxu1 }
 0x2a3   :  { %v724_v32 = vmul.f32 -1.442695, %v469_v28  ;;  %v473_v33 = vpop.f32.mrb[3].mxu1 }
 0x2a4   :  { %v725_v34 = vmul.f32 -1.442695, %v471_v30 }
 0x2a5   :  { %861 = vpow2.f32 %v724_v32 }
 0x2a6   :  { %863 = vpow2.f32 %v725_v34 }
 0x2af   :  { %v862_v35 = vpop.eup %861 }
 0x2b0   :  { %v864_v36 = vpop.eup %863  ;;  %v481_v37 = vadd.f32 1.0, %v862_v35 }
 0x2b1   :  { %v482_v38 = vadd.f32 1.0, %v864_v36 }
 0x2b2   :  { %865 = vrcp.f32 %v481_v37 }
 0x2b3   :  { %867 = vrcp.f32 %v482_v38 }
 0x2bc   :  { %v866_v39 = vpop.eup %865 }
 0x2bd   :  { %v868_v40 = vpop.eup %867  ;;  %v487_v41 = vmul.f32 %v866_v39, %v469_v28 }
 0x2be   :  { %v488_v42 = vmul.f32 %v868_v40, %v471_v30 }
 0x2bf   :  { %v489_v44 = vpack.c.bf16 %v487_v41, %v487_v41 }
 0x2c0   :  { %v490_v43 = vpack.c.bf16 %v488_v42, %v488_v42 }
 0x2c2   :  { %658 = vmatprep.mubr.bf16.mxu0 %v490_v43 }
 0x2c3   :  { %659 = vmatmul.mubr.bf16.vlgmr.msra.gmra.mrb[4].mxu0 %v489_v44 }
 0x396   :  { %v760_v45 = vpop.f32.mrb[4].mxu0 }
 0x397   :  { %v761_v48 = vpop.f32.mrb[5].mxu0 }
 0x398   :  { %v762_v49 = vadd.f32 %v761_v48, %v760_v45  ;;  %v763_v50 = vpop.f32.mrb[6].mxu0 }
 0x399   :  { %v764_v52 = vpop.f32.mrb[7].mxu0 }
 0x39a   :  { %v661_v53 = vadd.f32 %v762_v49, %v726_v46 }
 0x39c   :  { %v669_v54 = vmax.f32 %v661_v53, -20.0 }
 0x39e   :  { %v670_v55 = vmin.f32 %v669_v54, 2.0 }
 0x3a0   :  { %v671_v56 = vsel %vm668_vm3, %v670_v55, %v661_v53 }
 0x3a1   :  { %672 = vst [vmem:[%s1133_s8] sm:$0xff] %v671_v56 }
 0x3a2   :  { %677 = vsyncpa [#allocation4], 1 }
 0x3a3   :  { %678 = vsyncpa [#allocation6], 1 }
 0x3a4   :  { %679 = vsyncpa [#allocation9], 1 }

</bundles_post_ra>
